<compile_context>
chip_gen: v6e
topology: v6e:2x2x1
jax: 0.10.0
libtpu: 0.0.40
codegen_flags: <defaults>
</compile_context>

<pallas_src>
import functools
import math

import jax
import jax.numpy as jnp
from jax import lax
from jax.experimental import pallas as pl
from jax.experimental.pallas import tpu as pltpu

_LANE = 128


def _round_up(v, m):
    return -(-v // m) * m


@functools.lru_cache(maxsize=None)
def _vmem_capacity_bytes():
    try:
        cap = int(pltpu.get_tpu_info().vmem_capacity_bytes)
        if cap > 0:
            return cap
    except Exception:
        pass
    return 64 * 1024 * 1024  # conservative fallback (v7x per-TensorCore VMEM)


@functools.lru_cache(maxsize=None)
def _is_v7x():
    try:
        kind = jax.devices()[0].device_kind.lower()
    except Exception:
        return False
    return "v7" in kind or "7x" in kind


def _choose_tiles(M, N, K, x_isz, w_isz, out_isz, acc_isz, budget, two_core):
    """Pick (tm, tn, tk) against a VMEM working-set budget.

    Whole K is folded into a single block whenever it fits; otherwise tk is a
    128-multiple dividing K when possible (so no HBM K padding is required).
    """
    # Sublane multiple follows the most-packed of the x / output dtypes.
    sub = max(8, 32 // max(min(x_isz, out_isz), 1))

    cap_m, cap_n = 512, 512
    if M >= 4 * N:
        cap_m, cap_n = 1024, 256
    elif N >= 4 * M:
        cap_m, cap_n = 256, 1024
    tm = min(cap_m, _round_up(M, sub))
    tn = min(cap_n, _round_up(N, _LANE))
    if tm <= 64:
        # Decode-shaped call: pure weight streaming — widen the lane/output dim.
        tn = min(1024, _round_up(N, _LANE))

    def _out_bytes(tm_, tn_):
        # double-buffered output block (+ optional f32/int32 scratch accumulator)
        return tm_ * tn_ * (2 * out_isz + acc_isz)

    def _k_unit_bytes(tm_, tn_):
        # double-buffered x and w tiles, per element of tk
        return 2 * (tm_ * x_isz + tn_ * w_isz)

    # Shrink tm/tn until at least a 128-deep K slab fits the budget.
    while _out_bytes(tm, tn) + _LANE * _k_unit_bytes(tm, tn) > budget:
        if tn >= tm and tn > _LANE:
            tn = max(_LANE, tn // 2)
        elif tm > sub:
            tm = max(sub, tm // 2)
        else:
            break

    # On a 2-TensorCore part make sure the parallel grid has >= 2 steps.
    if two_core and pl.cdiv(M, tm) * pl.cdiv(N, tn) < 2:
        if N >= 2 * _LANE:
            tn = _round_up(pl.cdiv(N, 2), _LANE)
        elif M >= 2 * sub:
            tm = _round_up(pl.cdiv(M, 2), sub)

    tk_cap = (budget - _out_bytes(tm, tn)) // _k_unit_bytes(tm, tn)
    tk_cap = max(_LANE, (tk_cap // _LANE) * _LANE)

    if K <= tk_cap:
        return tm, tn, K            # whole K folded; block == full dim is always legal
    if K % _LANE == 0:
        q = K // _LANE
        for steps in range(pl.cdiv(K, tk_cap), q + 1):
            if q % steps == 0:
                return tm, tn, K // steps   # tk | K  -> no HBM padding needed
    # Rare: K not 128-aligned and too large to fold -> wrapper pads K to tk multiple.
    return tm, tn, tk_cap


def _mxu_dot(x, w, transpose_rhs, compute_dtype, acc_dtype):
    if x.dtype != compute_dtype:
        x = x.astype(compute_dtype)
    if w.dtype != compute_dtype:
        w = w.astype(compute_dtype)
    if transpose_rhs:
        # x: (tm, tk), w: (tn, tk): contract on the last dim of both -> (tm, tn).
        return lax.dot_general(x, w, (((1,), (1,)), ((), ())),
                               preferred_element_type=acc_dtype)
    return jnp.dot(x, w, preferred_element_type=acc_dtype)


def _kernel_single(x_ref, w_ref, o_ref, *, transpose_rhs, compute_dtype, acc_dtype):
    """Whole K in one block: single MXU push, no accumulator or epilogue."""
    o_ref[...] = _mxu_dot(x_ref[...], w_ref[...], transpose_rhs,
                          compute_dtype, acc_dtype).astype(o_ref.dtype)


def _kernel_acc_inplace(x_ref, w_ref, o_ref, *, transpose_rhs, compute_dtype, acc_dtype):
    """K-reduction; result dtype == acc dtype, so accumulate into the resident out block."""
    part = _mxu_dot(x_ref[...], w_ref[...], transpose_rhs, compute_dtype, acc_dtype)
    k = pl.program_id(2)

    @pl.when(k == 0)
    def _():
        o_ref[...] = part

    @pl.when(k != 0)
    def _():
        o_ref[...] += part


def _kernel_acc_scratch(x_ref, w_ref, o_ref, acc_ref, *, transpose_rhs, compute_dtype,
                        acc_dtype):
    """K-reduction with a wide VMEM accumulator + epilogue cast (narrow out dtypes)."""
    @pl.when(pl.program_id(2) == 0)
    def _():
        acc_ref[...] = jnp.zeros_like(acc_ref)

    acc_ref[...] += _mxu_dot(x_ref[...], w_ref[...], transpose_rhs, compute_dtype,
                             acc_dtype)

    @pl.when(pl.program_id(2) == pl.num_programs(2) - 1)
    def _():
        o_ref[...] = acc_ref[...].astype(o_ref.dtype)


@functools.partial(jax.jit,
                   static_argnames=("transpose_weight", "bf16_compute", "_tiles"))
def linear_layer(x, weight, *, transpose_weight=True, bf16_compute=False, _tiles=None):
    """Pallas TPU equivalent of LinearLayer.forward."""
    orig_shape = x.shape
    K = orig_shape[-1]
    M = math.prod(orig_shape[:-1]) if len(orig_shape) > 1 else 1
    x2 = x.reshape(M, K)                      # metadata-only; no dtype cast here

    if transpose_weight:
        N, Kw = weight.shape                  # torch nn.Linear layout (out, in)
    else:
        Kw, N = weight.shape
    if Kw != K:
        raise ValueError(f"contraction mismatch: x has K={K}, weight has K={Kw}")

    result_dtype = jnp.promote_types(x.dtype, weight.dtype)
    if jnp.issubdtype(result_dtype, jnp.integer):
        if _is_v7x():
            # TODO(synk): v7x MXU has no integer mode; a real int8 path should
            # requantize to fp8 with scales. Fall back to bf16 compute here.
            compute_dtype, acc_dtype = jnp.bfloat16, jnp.float32
        else:
            compute_dtype, acc_dtype = result_dtype, jnp.int32   # native int MXU
    else:
        compute_dtype = result_dtype
        if bf16_compute and compute_dtype == jnp.float32:
            compute_dtype = jnp.bfloat16      # opt-in: numerics-visible speedup
        acc_dtype = jnp.float32

    x_isz = jnp.dtype(x.dtype).itemsize
    w_isz = jnp.dtype(weight.dtype).itemsize
    out_isz = jnp.dtype(result_dtype).itemsize
    acc_isz = 0 if result_dtype == jnp.dtype(acc_dtype) else jnp.dtype(acc_dtype).itemsize

    cap = _vmem_capacity_bytes()
    if _is_v7x():
        cap = min(cap, 64 * 1024 * 1024)      # per-TensorCore VMEM on v7x
    budget = int(cap * 0.45)
    vmem_limit = int(cap * 0.9)

    if _tiles is not None:
        tm, tn, tk = _tiles
    else:
        tm, tn, tk = _choose_tiles(M, N, K, x_isz, w_isz, out_isz, acc_isz,
                                   budget, _is_v7x())
    # Never let a block dim exceed the array dim: full-dim blocks are always legal,
    # oversized ones are not. (Boundary blocks that don't divide M/N are masked.)
    tm = min(tm, M)
    tn = min(tn, N)

    # K must be covered exactly by tk blocks (garbage in OOB K would corrupt the
    # reduction); M/N boundary blocks are masked by Pallas, so they need no pad.
    K_p = _round_up(K, tk)
    if K_p != K:
        x2 = jnp.pad(x2, ((0, 0), (0, K_p - K)))
        if transpose_weight:
            weight = jnp.pad(weight, ((0, 0), (0, K_p - K)))
        else:
            weight = jnp.pad(weight, ((0, K_p - K), (0, 0)))
    k_steps = K_p // tk

    g_m, g_n = pl.cdiv(M, tm), pl.cdiv(N, tn)
    cost = pl.CostEstimate(
        flops=2 * M * N * K,
        transcendentals=0,
        # Actual tiled HBM traffic: operands are re-streamed per output tile col/row.
        bytes_accessed=M * K_p * x_isz * g_n + K_p * N * w_isz * g_m + M * N * out_isz,
    )

    if transpose_weight:
        w_block = (tn, tk)
        w_single = pl.BlockSpec(w_block, lambda i, j: (j, 0))
        w_multi = pl.BlockSpec(w_block, lambda i, j, k: (j, k))
    else:
        w_block = (tk, tn)
        w_single = pl.BlockSpec(w_block, lambda i, j: (0, j))
        w_multi = pl.BlockSpec(w_block, lambda i, j, k: (k, j))

    out_shape = jax.ShapeDtypeStruct((M, N), result_dtype)

    if k_steps == 1:
        kern = functools.partial(_kernel_single, transpose_rhs=transpose_weight,
                                 compute_dtype=compute_dtype, acc_dtype=acc_dtype)
        out2 = pl.pallas_call(
            kern,
            out_shape=out_shape,
            grid_spec=pltpu.PrefetchScalarGridSpec(
                num_scalar_prefetch=0,
                grid=(g_m, g_n),
                in_specs=[pl.BlockSpec((tm, tk), lambda i, j: (i, 0)), w_single],
                out_specs=pl.BlockSpec((tm, tn), lambda i, j: (i, j)),
            ),
            compiler_params=pltpu.CompilerParams(
                dimension_semantics=("parallel", "parallel"),
                vmem_limit_bytes=vmem_limit,
            ),
            cost_estimate=cost,
        )(x2, weight)
    else:
        in_place = (acc_isz == 0)
        if in_place:
            kern = functools.partial(_kernel_acc_inplace, transpose_rhs=transpose_weight,
                                     compute_dtype=compute_dtype, acc_dtype=acc_dtype)
            scratch = ()
        else:
            kern = functools.partial(_kernel_acc_scratch, transpose_rhs=transpose_weight,
                                     compute_dtype=compute_dtype, acc_dtype=acc_dtype)
            scratch = (pltpu.VMEM((tm, tn), acc_dtype),)
        out2 = pl.pallas_call(
            kern,
            out_shape=out_shape,
            grid_spec=pltpu.PrefetchScalarGridSpec(
                num_scalar_prefetch=0,
                grid=(g_m, g_n, k_steps),
                in_specs=[pl.BlockSpec((tm, tk), lambda i, j, k: (i, k)), w_multi],
                out_specs=pl.BlockSpec((tm, tn), lambda i, j, k: (i, j)),
                scratch_shapes=scratch,
            ),
            compiler_params=pltpu.CompilerParams(
                dimension_semantics=("parallel", "parallel", "arbitrary"),
                vmem_limit_bytes=vmem_limit,
            ),
            cost_estimate=cost,
        )(x2, weight)

    return out2.reshape(*orig_shape[:-1], N)


# TODO(synk): BaseLayer.trace_tensor / assert_not_nan are host-side debugging hooks
# with no Pallas equivalent; Theta parameter lookup is replaced by passing `weight`.

if __name__ == "__main__":
    key = jax.random.PRNGKey(0)
    kx, kw, kx2, kw2 = jax.random.split(key, 4)

    # Shapes implied by the forward: x: (batch, seq, hidden), weight: (out, hidden).
    batch, seq, hidden, out_features = 2, 8, 32, 64
    x = jax.random.normal(kx, (batch, seq, hidden), dtype=jnp.float32)
    weight = jax.random.normal(kw, (out_features, hidden), dtype=jnp.float32)
    y_ref = jnp.einsum("bsk,nk->bsn", x, weight, precision=lax.Precision.HIGHEST)

    # 1) Default path: transpose_weight=True (weight stays (N, K) — no relayout).
    y = jax.block_until_ready(linear_layer(x, weight, transpose_weight=True))
    assert y.shape == (batch, seq, out_features), y.shape
    assert jnp.allclose(y, y_ref, atol=1e-3, rtol=1e-3), "mismatch (transpose path)"

    # 2) transpose_weight=False path (weight stored (in, out)).
    w_kn = jnp.swapaxes(weight, 0, 1)
    y2 = jax.block_until_ready(linear_layer(x, w_kn, transpose_weight=False))
    assert jnp.allclose(y2, y_ref, atol=1e-3, rtol=1e-3), "mismatch (no-transpose path)"

    # 3) K-reduction path (accumulates directly into the resident f32 output block).
    hidden_big = 384
    xb = jax.random.normal(kx2, (batch, seq, hidden_big), dtype=jnp.float32)
    wb = jax.random.normal(kw2, (out_features, hidden_big), dtype=jnp.float32)
    y3 = jax.block_until_ready(
        linear_layer(xb, wb, transpose_weight=True, _tiles=(16, 64, 128))
    )
    y3_ref = jnp.einsum("bsk,nk->bsn", xb, wb, precision=lax.Precision.HIGHEST)
    assert jnp.allclose(y3, y3_ref, atol=1e-3, rtol=1e-3), "mismatch (K-reduction path)"

    # 4) Opt-in bf16 compute (numerics-visible, hence loose tolerance).
    y4 = jax.block_until_ready(
        linear_layer(x, weight, transpose_weight=True, bf16_compute=True)
    )
    assert jnp.allclose(y4, y_ref, atol=0.3, rtol=0.05), "mismatch (bf16-compute path)"

    print("KERNEL_OK")
</pallas_src>

<mosaic_0001>
module attributes {stable_mosaic.version = 11 : i64} {
  func.func @_kernel_single(%arg0: i32, %arg1: i32, %arg2: memref<16x32xf32, #tpu.memory_space<vmem>>, %arg3: memref<64x32xf32, #tpu.memory_space<vmem>>, %arg4: memref<16x64xf32, #tpu.memory_space<vmem>>) attributes {dimension_semantics = [#tpu.dimension_semantics<parallel>, #tpu.dimension_semantics<parallel>], iteration_bounds = array<i64: 1, 1>, scalar_prefetch = 0 : i64, scratch_operands = 0 : i64, tpu.core_type = #tpu.core_type<tc>, window_params = [{transform_indices = @transform_0, window_bounds = array<i64: 16, 32>}, {transform_indices = @transform_1, window_bounds = array<i64: 64, 32>}, {transform_indices = @transform_2, window_bounds = array<i64: 16, 64>}]} {
    %c0 = arith.constant 0 : index
    %c0_0 = arith.constant 0 : index
    %0 = vector.load %arg2[%c0, %c0_0] : memref<16x32xf32, #tpu.memory_space<vmem>>, vector<16x32xf32>
    %c0_1 = arith.constant 0 : index
    %c0_2 = arith.constant 0 : index
    %1 = vector.load %arg3[%c0_1, %c0_2] : memref<64x32xf32, #tpu.memory_space<vmem>>, vector<64x32xf32>
    %cst = arith.constant dense<0.000000e+00> : vector<16x64xf32>
    %2 = tpu.matmul %0, %1, %cst {dimension_numbers = #tpu.dot_dimension_numbers<[1], [1], [0], [0], [0, 0, 1, 0], [], []>} : vector<16x32xf32>, vector<64x32xf32>, vector<16x64xf32> -> vector<16x64xf32>
    %c0_3 = arith.constant 0 : index
    %c0_4 = arith.constant 0 : index
    %3 = vector.load %arg4[%c0_3, %c0_4] : memref<16x64xf32, #tpu.memory_space<vmem>>, vector<16x64xf32>
    tpu.vector_store %arg4[%c0_3, %c0_4], %2 {strides = array<i32>} : memref<16x64xf32, #tpu.memory_space<vmem>>, vector<16x64xf32>,
    return
  }
  func.func @transform_0(%arg0: i32, %arg1: i32) -> (i32, i32) {
    %c0_i32 = arith.constant 0 : i32
    %c0_i32_0 = arith.constant 0 : i32
    return %arg0, %c0_i32 : i32, i32
  }
  func.func @transform_1(%arg0: i32, %arg1: i32) -> (i32, i32) {
    %c0_i32 = arith.constant 0 : i32
    %c0_i32_0 = arith.constant 0 : i32
    return %arg1, %c0_i32 : i32, i32
  }
  func.func @transform_2(%arg0: i32, %arg1: i32) -> (i32, i32) {
    %c0_i32 = arith.constant 0 : i32
    return %arg0, %arg1 : i32, i32
  }
}

</mosaic_0001>

<bundles_post_ra>
// kernel: linear_layer.1
= control target key start
LH: loop header
LB: loop body
LE: loop exit
PB: predicated region body
PF: predicated region fallthrough
CT: control target
= control target key end

     0   :  { %vm22_vm0 = vcmask 261120   ;;  %s280_s0 = inlined_call_operand.vmem [shape: f32[16,32], index: 0, kind: input, shape index: {}]   ;;  %s281_s1 = inlined_call_operand.vmem [shape: f32[64,32], index: 1, kind: input, shape index: {}]   ;;  %s282_s2 = inlined_call_operand.hbm [shape: f32[16,64], index: 2, kind: output, shape index: {}]  }
   0x1   :  { %v21_v0 = vld [vmem:[%s281_s1 + $0x38] sm:$0xff]  ;;  %v20_v1 = vld [vmem:[%s281_s1 + $0x30] sm:$0xff]  ;;  %v12_v2 = vld [vmem:[%s280_s0] sm:$0xff] }
   0x2   :  { %167 = vmatprep.subr.msk.mxu0 %vm22_vm0, %v21_v0  ;;  %183 = vmatprep.mubr.msk.f32.mxu0 %vm22_vm0, %v12_v2 }
   0x3   :  { %168 = vmatpush3.xpose.msk.msra.mxu0 %vm22_vm0, %v21_v0 }
   0x4   :  { %169 = vmatprep.subr.msk.mxu0 %vm22_vm0, %v20_v1 }
   0x5   :  { %7 = vsyncpa [#allocation3], 0  ;;  %v19_v3 = vld [vmem:[%s281_s1 + $0x28] sm:$0xff]  ;;  %v18_v4 = vld [vmem:[%s281_s1 + $0x20] sm:$0xff]  ;;  %s211_s29 = smov [#allocation2]   ;;  %vm128_vm1 = vcmask 523264  }
   0x6   :  { %v17_v5 = vld [vmem:[%s281_s1 + $0x18] sm:$0xff]  ;;  %v16_v6 = vld [vmem:[%s281_s1 + $0x10] sm:$0xff]  ;;  %v15_v7 = vld [vmem:[%s281_s1 + $0x8] sm:$0xff]  ;;  %s136_s30 = sshll.u32 %s211_s29, 4  ;;  %s137_s30 = int_to_ptr.vmem [resolvable:$true] %s136_s30 }
   0x7   :  { %170 = vmatpush3.xpose.msk.msra.mxu0 %vm22_vm0, %v20_v1  ;;  %v14_v8 = vld [vmem:[%s281_s1] sm:$0xff]  ;;  %v13_v9 = vld [vmem:[%s280_s0 + $0x8] sm:$0xff]  ;;  %s189_s1 = scalar_lea.vmem %s137_s30, 256  ;;  %p194_p1 = scmp.lt.s32.totalorder %s137_s30, %s137_s30 }
   0x8   :  { %171 = vmatprep.subr.msk.mxu0 %vm22_vm0, %v19_v3  ;;  %p190_p0 = scmp.ne.s32.totalorder %s137_s30, %s189_s1  ;;  %p195_p2 = scmp.lt.s32.totalorder %s189_s1, %s189_s1 }
   0xa   :  { %p196_p3 = por %p195_p2, %p194_p1 }
   0xb   :  { %172 = vmatpush3.xpose.msk.msra.mxu0 %vm22_vm0, %v19_v3 }
   0xc   :  { %173 = vmatprep.subr.msk.mxu0 %vm22_vm0, %v18_v4  ;;  %p197_p4 = pnand %p196_p3, %p190_p0 }
   0xf   :  { %174 = vmatpush3.xpose.msk.msra.mxu0 %vm22_vm0, %v18_v4 }
  0x10   :  { %175 = vmatprep.subr.msk.mxu0 %vm22_vm0, %v17_v5 }
  0x13   :  { %176 = vmatpush3.xpose.msk.msra.mxu0 %vm22_vm0, %v17_v5 }
  0x14   :  { %177 = vmatprep.subr.msk.mxu0 %vm22_vm0, %v16_v6 }
  0x17   :  { %178 = vmatpush3.xpose.msk.msra.mxu0 %vm22_vm0, %v16_v6 }
  0x18   :  { %179 = vmatprep.subr.msk.mxu0 %vm22_vm0, %v15_v7 }
  0x1b   :  { %180 = vmatpush3.xpose.msk.msra.mxu0 %vm22_vm0, %v15_v7 }
  0x1c   :  { %181 = vmatprep.subr.msk.mxu0 %vm22_vm0, %v14_v8 }
  0x1f   :  { %182 = vmatpush3.xpose.msk.msra.mxu0 %vm22_vm0, %v14_v8 }
  0x22   :  { %184 = vmatmul.mubr.msk.f32.vlgmr.msra.gmra.mxu0 %vm22_vm0, %v13_v9 }
  0xe2   :  { %v185_v10 = vpop.f32.mrf.mxu0 }
  0xe3   :  { %130 = vst.msk [vmem:[#allocation2 + $0x8] sm:$0xff] %vm128_vm1, %v185_v10 }
  0xe4   :  { %v119_v11 = vpop.f32.mrf.mxu0 }
  0xe5   :  { %129 = vst.msk [vmem:[#allocation2] sm:$0xff] %vm128_vm1, %v119_v11 }
  0xe6   :  { %200 = shalt.err (!%p197_p4)
}
  0xe7   :  { %s212_s3 = smov 128   ;;  %s213_s4 = smov 8  }
  0xe8   :  { %142 = dma.vmem_to_hbm [thread:$0]  %s137_s30, 256, %s282_s2, [#allocation3], %s212_s3, %s212_s3, %s213_s4  }
  0xe9   :  { %209 = dma.done.wait [#allocation3], 256  }
  0xea   :  { %210 = vsyncadd [#allocation3], 4294967040 }
  0xeb   :  { %146 = vsyncpa [#allocation3], 1 }

</bundles_post_ra>
